<compile_context>
chip_gen: v7x
topology: tpu7x:2x2x1
jax: 0.10.0
libtpu: 0.0.40
codegen_flags: <defaults>
</compile_context>

<pallas_src>
import jax
import jax.numpy as jnp
from jax.experimental import pallas as pl
from jax.experimental.pallas import tpu as pltpu


def trans_head_kernel(enc_ref, w_att_ref, b_att_ref, w_cls_ref, b_cls_ref, out_ref):
    # enc_ref   : (TB, S, D) VMEM  encoded-feature tile (bf16, TB batch rows)
    # w_att_ref : (1, D)     VMEM  attention-score weights (Linear(D,1), transposed)
    # b_att_ref : (1, 1)     SMEM  attention-score bias (control scalar)
    # w_cls_ref : (D, L)     VMEM  classifier weights (Linear(D,L), transposed)
    # b_cls_ref : (1, L)     VMEM  classifier bias
    # out_ref   : (TB, L)    VMEM  log-softmax'ed logits for this batch tile

    # Upcast right after load: the HBM stream is bf16 (half the bytes of f32 on
    # the bandwidth-bound path); all math stays f32.  v5e has no bf16 VPU/EUP,
    # so the early upcast is mandatory there anyway.
    x = enc_ref[...].astype(jnp.float32)                              # [TB, S, D]

    # feature_attended = attention_weights(tanh(encoded_feature))
    # Scores kept as a lane-dense (TB, S) tile; reduction over the lane (D) axis.
    # TODO(synk): if VMEM ever limits TB, compute this pass in S-chunks with an
    # unrolled fori_loop so the tanh temporary is chunk-sized, not TB*S*D.
    # TODO(synk): on v5e, check the EUP slot for the full-slab tanh; swap in a
    # VPU polynomial approximation if it binds before the ~0.8 TB/s roofline.
    t = jnp.tanh(x)
    scores = jnp.sum(t * w_att_ref[...], axis=-1) + b_att_ref[0, 0]   # [TB, S]

    # softmax over the sequence axis (torch dim=1 of [B, S, 1]) -- lane reductions.
    m = jnp.max(scores, axis=-1, keepdims=True)                       # [TB, 1]
    e = jnp.exp(scores - m)
    attn = e * pl.reciprocal(jnp.sum(e, axis=-1, keepdims=True), approx=False)  # [TB, S]

    # Attention pooling on the (otherwise idle) MXU:
    #   pooled[b, d] = sum_s attn[b, s] * x[b, s, d]
    # Batched [1,S]@[S,D] contraction (einsum 'bqs,bsd->bqd' with q == 1), the
    # same batched-matmul shape Pallas' flash-attention kernels use.  This avoids
    # materializing a second [TB,S,D] f32 temporary in VMEM and the
    # broadcast-multiply (VPU) + sublane reduce (XLU) of the old formulation.
    pooled = jax.lax.dot_general(
        attn[:, None, :], x,
        dimension_numbers=(((2,), (1,)), ((0,), (0,))),
        preferred_element_type=jnp.float32)[:, 0, :]                  # [TB, D]

    # classifier: one (TB, D) @ (D, L) MXU matmul per grid step.
    logits = jnp.dot(pooled, w_cls_ref[...],
                     preferred_element_type=jnp.float32) + b_cls_ref[...]  # [TB, L]

    # log_softmax over labels
    lm = jnp.max(logits, axis=-1, keepdims=True)
    z = logits - lm
    lse = jnp.log(jnp.sum(jnp.exp(z), axis=-1, keepdims=True))
    out_ref[...] = z - lse                                            # [TB, L]


def _vmem_budget_bytes():
    """Per-generation scoped-VMEM budget (~70% of physical capacity):
    ~90 MiB on v5e/v6e (128 MiB physical), ~45 MiB on v7x (64 MiB physical)."""
    try:
        cap = pltpu.get_tpu_info().vmem_capacity_bytes
    except Exception:
        cap = 64 * 1024 * 1024  # conservative fallback, safe on all generations
    return int(cap * 0.70)


def _pick_batch_tile(B, S, D, L, in_itemsize, vmem_budget):
    """Largest batch tile whose *real* working set fits the VMEM budget.

    Working set per batch row ~= 2 double-buffered bf16 input slabs
    + f32 upcast + f32 tanh temporaries; weights/bias/output are negligible.
    TB is either a multiple of 8 or exactly B, so the (TB, S)/(TB, L) blocks
    keep an 8-aligned sublane dim (no masked partial stores / lowering fails).
    """
    bytes_per_row = S * D * (2 * in_itemsize + 2 * 4)
    weight_bytes = 4 * (D + D * L + L) + (64 << 10)  # weights + slack
    cap = max(1, (vmem_budget - weight_bytes) // max(1, bytes_per_row))

    if cap >= B:
        tb = B
    else:
        tb = (cap // 8) * 8
        while tb >= 8 and B % tb:
            tb -= 8
        if tb < 8:
            # TODO(synk): for awkward batch sizes (no 8-aligned divisor under the
            # cap) pad B to the next multiple of 8 on the host side instead.
            tb = B

    # Prefer >= 2 grid steps when B allows an 8-aligned split: feeds both
    # TensorCores on v7x and gives the pipeliner DMA/compute overlap everywhere.
    if tb == B and B >= 16 and (B // 2) % 8 == 0:
        tb = B // 2
    return tb


def trans_model_forward(encoded, w_att, b_att, w_cls, b_cls, labels=None):
    """Pallas-backed equivalent of Trans_Model.forward given encoded_feature."""
    B, S, D = encoded.shape
    L = w_cls.shape[1]

    # Stream the [B, S, D] slab as bf16 (kernel is HBM-bandwidth bound); the
    # kernel upcasts per tile and accumulates in f32.
    enc = encoded.astype(jnp.bfloat16)

    vmem_budget = _vmem_budget_bytes()
    TB = _pick_batch_tile(B, S, D, L, enc.dtype.itemsize, vmem_budget)

    log_probs = pl.pallas_call(
        trans_head_kernel,
        out_shape=jax.ShapeDtypeStruct((B, L), jnp.float32),
        grid_spec=pltpu.PrefetchScalarGridSpec(
            num_scalar_prefetch=0,
            grid=(B // TB,),
            in_specs=[
                pl.BlockSpec((TB, S, D), lambda b: (b, 0, 0)),
                pl.BlockSpec((1, D), lambda b: (0, 0)),
                # scalar attention bias lives in SMEM (no padded VMEM tile / DMA)
                pl.BlockSpec(memory_space=pltpu.MemorySpace.SMEM),
                pl.BlockSpec((D, L), lambda b: (0, 0)),
                pl.BlockSpec((1, L), lambda b: (0, 0)),
            ],
            out_specs=pl.BlockSpec((TB, L), lambda b: (b, 0)),
        ),
        compiler_params=pltpu.CompilerParams(
            # Batch tiles are fully independent -> shard across TCs on v7x.
            # TODO(synk): evaluate pltpu.CORE_PARALLEL here once measured on v7x;
            # for very long S, add an inner "arbitrary" S axis with an
            # online-softmax accumulator so VMEM decouples from sequence length.
            dimension_semantics=("parallel",),
            # Scoped VMEM raised to match the per-generation budget used for TB.
            vmem_limit_bytes=vmem_budget,
        ),
    )(enc, w_att, b_att, w_cls, b_cls)

    out = {"logits": log_probs}
    if labels is not None:
        # PyTorch applies CrossEntropyLoss ON TOP of already log_softmax'ed
        # logits (i.e. log_softmax is applied twice) -- reproduce that exactly.
        z = log_probs - jax.nn.logsumexp(log_probs, axis=-1, keepdims=True)
        nll = -jnp.take_along_axis(z, labels[:, None], axis=-1)[:, 0]
        out["loss"] = jnp.mean(nll)
    return out


def ref_forward(encoded, w_att, b_att, w_cls, b_cls):
    """Pure-JAX reference for numerical verification."""
    scores = jnp.einsum("bsd,d->bs", jnp.tanh(encoded), w_att[0]) + b_att[0, 0]
    attn = jax.nn.softmax(scores, axis=1)[..., None]
    pooled = jnp.sum(attn * encoded, axis=1)
    logits = pooled @ w_cls + b_cls[0]
    return jax.nn.log_softmax(logits, axis=-1)


if __name__ == "__main__":
    # Small shapes consistent with the module's forward:
    #   batch B=2, sequence S=8, intermediate_dims D=32, num_labels L=4
    B, S, D, L = 2, 8, 32, 4

    key = jax.random.PRNGKey(0)
    k_enc, k_wa, k_ba, k_wc, k_bc = jax.random.split(key, 5)

    # Stand-in for text_embbeding(text) -> encoder(embbed, mask) output.
    encoded = jax.random.normal(k_enc, (B, S, D), dtype=jnp.float32)

    # Deterministic parameter init (shapes from __init__):
    #   attention_weights = nn.Linear(intermediate_dims, 1)
    #   classifier        = nn.Linear(intermediate_dims, num_labels)
    w_att = 0.05 * jax.random.normal(k_wa, (1, D), dtype=jnp.float32)
    b_att = 0.05 * jax.random.normal(k_ba, (1, 1), dtype=jnp.float32)
    w_cls = 0.05 * jax.random.normal(k_wc, (D, L), dtype=jnp.float32)
    b_cls = 0.05 * jax.random.normal(k_bc, (1, L), dtype=jnp.float32)

    labels = jnp.array([1, 3], dtype=jnp.int32)

    out = trans_model_forward(encoded, w_att, b_att, w_cls, b_cls, labels=labels)
    logits = jax.block_until_ready(out["logits"])
    loss = jax.block_until_ready(out["loss"])

    # Compare against the reference evaluated on the SAME bf16-rounded inputs
    # that the kernel streams (apples-to-apples; all math f32 on both sides).
    enc_bf16_vals = encoded.astype(jnp.bfloat16).astype(jnp.float32)
    ref = ref_forward(enc_bf16_vals, w_att, b_att, w_cls, b_cls)

    assert logits.shape == (B, L)
    assert jnp.allclose(logits, ref, atol=3e-5, rtol=3e-5), "mismatch vs reference"
    assert jnp.isfinite(loss)

    print("KERNEL_OK")
</pallas_src>

<mosaic_0001>
module attributes {stable_mosaic.version = 11 : i64} {
  func.func @trans_head_kernel(%arg0: i32, %arg1: memref<2x8x32xbf16, #tpu.memory_space<vmem>>, %arg2: memref<1x32xf32, #tpu.memory_space<vmem>>, %arg3: memref<1x1xf32, #tpu.memory_space<smem>>, %arg4: memref<32x4xf32, #tpu.memory_space<vmem>>, %arg5: memref<1x4xf32, #tpu.memory_space<vmem>>, %arg6: memref<2x4xf32, #tpu.memory_space<vmem>>) attributes {dimension_semantics = [#tpu.dimension_semantics<parallel>], iteration_bounds = array<i64: 1>, scalar_prefetch = 0 : i64, scratch_operands = 0 : i64, tpu.core_type = #tpu.core_type<tc>, window_params = [{transform_indices = @transform_0, window_bounds = array<i64: 2, 8, 32>}, {pipeline_mode = #tpu.pipeline_mode<synchronous>, transform_indices = @transform_1, window_bounds = array<i64: 1, 32>}, {transform_indices = @transform_2, window_bounds = array<i64: 1, 1>}, {pipeline_mode = #tpu.pipeline_mode<synchronous>, transform_indices = @transform_3, window_bounds = array<i64: 32, 4>}, {pipeline_mode = #tpu.pipeline_mode<synchronous>, transform_indices = @transform_4, window_bounds = array<i64: 1, 4>}, {transform_indices = @transform_5, window_bounds = array<i64: 2, 4>}]} {
    %c0 = arith.constant 0 : index
    %c0_0 = arith.constant 0 : index
    %c0_1 = arith.constant 0 : index
    %0 = vector.load %arg1[%c0, %c0_0, %c0_1] : memref<2x8x32xbf16, #tpu.memory_space<vmem>>, vector<2x8x32xbf16>
    %1 = arith.extf %0 : vector<2x8x32xbf16> to vector<2x8x32xf32>
    %2 = math.tanh %1 : vector<2x8x32xf32>
    %c0_2 = arith.constant 0 : index
    %c0_3 = arith.constant 0 : index
    %3 = vector.load %arg2[%c0_2, %c0_3] : memref<1x32xf32, #tpu.memory_space<vmem>>, vector<1x32xf32>
    %4 = vector.shape_cast %3 : vector<1x32xf32> to vector<1x1x32xf32>
    %5 = vector.broadcast %4 : vector<1x1x32xf32> to vector<2x8x32xf32>
    %6 = arith.mulf %2, %5 : vector<2x8x32xf32>
    %cst = arith.constant dense<0.000000e+00> : vector<2x8xf32>
    %7 = vector.multi_reduction <add>, %6, %cst [2] : vector<2x8x32xf32> to vector<2x8xf32>
    %c0_4 = arith.constant 0 : index
    %c0_5 = arith.constant 0 : index
    %8 = memref.load %arg3[%c0_4, %c0_5] : memref<1x1xf32, #tpu.memory_space<smem>>
    %9 = vector.broadcast %8 : f32 to vector<2x8xf32>
    %10 = arith.addf %7, %9 : vector<2x8xf32>
    %cst_6 = arith.constant dense<0xFF800000> : vector<2xf32>
    %11 = vector.multi_reduction <maximumf>, %10, %cst_6 [1] : vector<2x8xf32> to vector<2xf32>
    %12 = vector.shape_cast %11 : vector<2xf32> to vector<2x1xf32>
    %13 = vector.broadcast %12 : vector<2x1xf32> to vector<2x8xf32>
    %14 = arith.subf %10, %13 : vector<2x8xf32>
    %15 = math.exp %14 : vector<2x8xf32>
    %cst_7 = arith.constant dense<0.000000e+00> : vector<2xf32>
    %16 = vector.multi_reduction <add>, %15, %cst_7 [1] : vector<2x8xf32> to vector<2xf32>
    %17 = vector.shape_cast %16 : vector<2xf32> to vector<2x1xf32>
    %18 = tpu.reciprocal %17 : vector<2x1xf32> -> vector<2x1xf32>
    %19 = vector.broadcast %18 : vector<2x1xf32> to vector<2x8xf32>
    %20 = arith.mulf %15, %19 : vector<2x8xf32>
    %21 = vector.shape_cast %20 : vector<2x8xf32> to vector<2x1x8xf32>
    %cst_8 = arith.constant dense<0.000000e+00> : vector<2x1x32xf32>
    %22 = tpu.matmul %21, %1, %cst_8 {dimension_numbers = #tpu.dot_dimension_numbers<[2], [1], [1], [2], [0, 0, 0, 1, 1, 2], [0], [0]>} : vector<2x1x8xf32>, vector<2x8x32xf32>, vector<2x1x32xf32> -> vector<2x1x32xf32>
    %23 = vector.shape_cast %22 : vector<2x1x32xf32> to vector<2x32xf32>
    %c0_9 = arith.constant 0 : index
    %c0_10 = arith.constant 0 : index
    %24 = vector.load %arg4[%c0_9, %c0_10] : memref<32x4xf32, #tpu.memory_space<vmem>>, vector<32x4xf32>
    %cst_11 = arith.constant dense<0.000000e+00> : vector<2x4xf32>
    %25 = tpu.matmul %23, %24, %cst_11 {dimension_numbers = #tpu.dot_dimension_numbers<[1], [0], [0], [1], [0, 0, 1, 1], [], []>} : vector<2x32xf32>, vector<32x4xf32>, vector<2x4xf32> -> vector<2x4xf32>
    %c0_12 = arith.constant 0 : index
    %c0_13 = arith.constant 0 : index
    %26 = vector.load %arg5[%c0_12, %c0_13] : memref<1x4xf32, #tpu.memory_space<vmem>>, vector<1x4xf32>
    %27 = vector.broadcast %26 : vector<1x4xf32> to vector<2x4xf32>
    %28 = arith.addf %25, %27 : vector<2x4xf32>
    %cst_14 = arith.constant dense<0xFF800000> : vector<2xf32>
    %29 = vector.multi_reduction <maximumf>, %28, %cst_14 [1] : vector<2x4xf32> to vector<2xf32>
    %30 = vector.shape_cast %29 : vector<2xf32> to vector<2x1xf32>
    %31 = vector.broadcast %30 : vector<2x1xf32> to vector<2x4xf32>
    %32 = arith.subf %28, %31 : vector<2x4xf32>
    %33 = math.exp %32 : vector<2x4xf32>
    %cst_15 = arith.constant dense<0.000000e+00> : vector<2xf32>
    %34 = vector.multi_reduction <add>, %33, %cst_15 [1] : vector<2x4xf32> to vector<2xf32>
    %35 = vector.shape_cast %34 : vector<2xf32> to vector<2x1xf32>
    %36 = math.log %35 : vector<2x1xf32>
    %37 = vector.broadcast %36 : vector<2x1xf32> to vector<2x4xf32>
    %38 = arith.subf %32, %37 : vector<2x4xf32>
    %c0_16 = arith.constant 0 : index
    %c0_17 = arith.constant 0 : index
    %39 = vector.load %arg6[%c0_16, %c0_17] : memref<2x4xf32, #tpu.memory_space<vmem>>, vector<2x4xf32>
    tpu.vector_store %arg6[%c0_16, %c0_17], %38 {strides = array<i32>} : memref<2x4xf32, #tpu.memory_space<vmem>>, vector<2x4xf32>,
    return
  }
  func.func @transform_0(%arg0: i32) -> (i32, i32, i32) {
    %c0_i32 = arith.constant 0 : i32
    %c0_i32_0 = arith.constant 0 : i32
    %c0_i32_1 = arith.constant 0 : i32
    return %arg0, %c0_i32, %c0_i32_0 : i32, i32, i32
  }
  func.func @transform_1(%arg0: i32) -> (i32, i32) {
    %c0_i32 = arith.constant 0 : i32
    %c0_i32_0 = arith.constant 0 : i32
    %c0_i32_1 = arith.constant 0 : i32
    return %c0_i32, %c0_i32_0 : i32, i32
  }
  func.func @transform_2(%arg0: i32) -> (i32, i32) {
    %c0_i32 = arith.constant 0 : i32
    %c0_i32_0 = arith.constant 0 : i32
    %c0_i32_1 = arith.constant 0 : i32
    return %c0_i32, %c0_i32_0 : i32, i32
  }
  func.func @transform_3(%arg0: i32) -> (i32, i32) {
    %c0_i32 = arith.constant 0 : i32
    %c0_i32_0 = arith.constant 0 : i32
    %c0_i32_1 = arith.constant 0 : i32
    return %c0_i32, %c0_i32_0 : i32, i32
  }
  func.func @transform_4(%arg0: i32) -> (i32, i32) {
    %c0_i32 = arith.constant 0 : i32
    %c0_i32_0 = arith.constant 0 : i32
    %c0_i32_1 = arith.constant 0 : i32
    return %c0_i32, %c0_i32_0 : i32, i32
  }
  func.func @transform_5(%arg0: i32) -> (i32, i32) {
    %c0_i32 = arith.constant 0 : i32
    %c0_i32_0 = arith.constant 0 : i32
    return %arg0, %c0_i32 : i32, i32
  }
}

</mosaic_0001>

<bundles_post_ra>
// kernel: tpu_custom_call.1
= control target key start
LH: loop header
LB: loop body
LE: loop exit
PB: predicated region body
PF: predicated region fallthrough
CT: control target
= control target key end

     0   :  { %s575_s0 = inlined_call_operand.vmem [shape: bf16[2,8,32], index: 0, kind: input, shape index: {}]   ;;  %s576_s1 = inlined_call_operand.vmem [shape: f32[1,32], index: 1, kind: input, shape index: {}]   ;;  %s577_s2 = inlined_call_operand.<no memory space> [shape: f32[1,1], index: 2, kind: input, shape index: {}]   ;;  %s578_s3 = inlined_call_operand.vmem [shape: f32[32,4], index: 3, kind: input, shape index: {}]   ;;  %s579_s4 = inlined_call_operand.vmem [shape: f32[1,4], index: 4, kind: input, shape index: {}]   ;;  %s580_s5 = inlined_call_operand.hbm [shape: f32[2,4], index: 5, kind: output, shape index: {}]  }
   0x1   :  { %v523_v0 = vld [vmem:[%s575_s0] sm:$0xff]  }
   0x2   :  { %11 = vsyncpa [#allocation4], 0  ;;  %v402_v1 = vunpack.c.l.bf16 %v523_v0  ;;  %v403_v2 = vunpack.c.h.bf16 %v523_v0  ;;  %v395_v3 = vld [vmem:[%s576_s1] ss:$0 sm:$0xff]  ;;  %vm37_vm0 = vcmask 261120   ;;  %v50_v10 = vlaneseq  ;;  %v281_v53 = vld [vmem:[%s578_s3 + $0x8] sm:$0xff] }
   0x3   :  { %v45_v13 = vstv %s577_s2  ;;  %vm60_vm1 = vcmask 1041409   ;;  %vm63_vm2 = vcmask 58368   ;;  %v485_v23 = vmov 0   ;;  %v280_v52 = vld [vmem:[%s578_s3] sm:$0xff]  ;;  %v282_v56 = vld [vmem:[%s578_s3 + $0x10] sm:$0xff]  ;;  %v283_v57 = vld [vmem:[%s578_s3 + $0x18] sm:$0xff] }
   0x4   :  { %447 = vtanh.f32 %v402_v1  ;;  %v51_v11 = vand.u32 127, %v50_v10  ;;  %v53_v12 = vshrl.u32 %v50_v10, 7  ;;  %446 = vset.pattern.permute.xlu0 %v485_v23  ;;  %445 = vset.pattern.permute.xlu1 %v485_v23  ;;  %v486_v41 = vmov 0.0   ;;  %s489_s3 = smov [#allocation3]  }
   0x5   :  { %449 = vtanh.f32 %v403_v2  ;;  %413 = vmatprep.subr.mxu1 %v486_v41  ;;  %vm487_vm3 = vmmov 0   ;;  %vm127_vm4 = vcmask 64512   ;;  %v435_v54 = vpack.c.bf16 %v281_v53, %v280_v52 }
   0x6   :  { %v54_v15 = vsub.s32 %v51_v11, %v53_v12  ;;  %v70_v24 = vsub.s32 0, %v53_v12  ;;  %v74_v25 = vsub.s32 1, %v53_v12  ;;  %414 = vmatpush3.msra.mxu1 %v402_v1  ;;  %415 = vmatprep.mubr.msk.f32.mxu1 %vm487_vm3, %v486_v41  ;;  %v488_v55 = vmov 0.0|0.0   ;;  %v398_v1 = vld [vmem:[%s579_s4] ss:$0 sm:$0xff]  ;;  %s387_s4 = sshll.u32 %s489_s3, 4  ;;  %s388_s4 = int_to_ptr.vmem [resolvable:$true] %s387_s4 }
   0x7   :  { %418 = vmatprep.subr.mxu1 %v486_v41  ;;  %431 = vmatprep.mubr.msk.f32.mxu0 %vm487_vm3, %v486_v41  ;;  %v438_v58 = vpack.c.bf16 %v283_v57, %v282_v56  ;;  %vm367_vm5 = vcmask 25600   ;;  %s461_s6 = scalar_lea.vmem %s388_s4, 32  ;;  %p466_p1 = scmp.lt.s32.totalorder %s388_s4, %s388_s4 }
   0x8   :  { %434 = vmatprep.subr.bf16.mxu0 %v488_v55  ;;  %p462_p0 = scmp.ne.s32.totalorder %s388_s4, %s461_s6  ;;  %p467_p2 = scmp.lt.s32.totalorder %s461_s6, %s461_s6 }
   0x9   :  { %436 = vmatpush3.bf16.msra.mxu0 %v435_v54 }
   0xa   :  { %437 = vmatprep.subr.bf16.mxu0 %v488_v55  ;;  %p468_p3 = por %p467_p2, %p466_p1 }
   0xc   :  { %p469_p4 = pnand %p468_p3, %p462_p0 }
   0xd   :  { %439 = vmatpush3.bf16.msra.mxu0 %v438_v58 }
   0xe   :  { %v448_v4 = vpop.eup %447 }
   0xf   :  { %v450_v5 = vpop.eup %449  ;;  %v35_v6 = vmul.f32 %v448_v4, %v395_v3 }
  0x10   :  { %v36_v7 = vmul.f32 %v450_v5, %v395_v3 }
  0x11   :  { %v38_v8 = vsel %vm37_vm0, %v35_v6, 0.0 }
  0x12   :  { %39 = vadd.xlane.f32.xlu0 %v38_v8  ;;  %v41_v9 = vsel %vm37_vm0, %v36_v7, 0.0 }
  0x16   :  { %42 = vadd.xlane.f32.xlu0 %v41_v9 }
  0x9f   :  { %v40_v14 = vpop.xlane.xlu0 %39 }
  0xa0   :  { %v46_v16 = vadd.f32 %v45_v13, %v40_v14 }
  0xa2   :  { %v55_v19 = vrot.slane %v46_v16, %v54_v15 }
  0xa3   :  { %v43_v17 = vpop.xlane.xlu0 %42 }
  0xa4   :  { %v47_v18 = vadd.f32 %v45_v13, %v43_v17 }
  0xa6   :  { %v59_v20 = vrot.slane %v47_v18, %v54_v15 }
  0xa8   :  { %v61_v21 = vsel %vm60_vm1, %v59_v20, %v55_v19 }
  0xa9   :  { %v64_v22 = vsel %vm63_vm2, %v61_v21, -inf }
  0xaa   :  { %65 = vmax.xlane.f32.xlu1 %v64_v22 }
 0x137   :  { %v66_v26 = vpop.xlane.xlu1 %65 }
 0x138   :  { %v71_v27 = vrot.slane %v66_v26, %v70_v24  ;;  %v75_v28 = vrot.slane %v66_v26, %v74_v25 }
 0x13a   :  { %v78_v29 = vsub.f32 %v46_v16, %v71_v27  ;;  %v79_v30 = vsub.f32 %v47_v18, %v75_v28 }
 0x13c   :  { %v80_v31 = vmul.f32 1.442695, %v78_v29  ;;  %v82_v32 = vmul.f32 1.442695, %v79_v30 }
 0x13e   :  { %451 = vpow2.f32 %v80_v31 }
 0x13f   :  { %453 = vpow2.f32 %v82_v32 }
 0x148   :  { %v452_v33 = vpop.eup %451 }
 0x149   :  { %v454_v34 = vpop.eup %453  ;;  %87 = vperm.xlu1 %445, %v452_v33  }
 0x14a   :  { %90 = vperm.xlu0 %446, %v454_v34  }
 0x1c8   :  { %v88_v35 = vpop.permute.xlu1 %87 }
 0x1c9   :  { %v91_v36 = vpop.permute.xlu0 %90  ;;  %v95_v37 = vrot.slane %v88_v35, %v54_v15 }
 0x1ca   :  { %v99_v38 = vrot.slane %v91_v36, %v54_v15 }
 0x1cc   :  { %v100_v39 = vsel %vm60_vm1, %v99_v38, %v95_v37 }
 0x1cd   :  { %v102_v40 = vsel %vm63_vm2, %v100_v39, 0.0 }
 0x1ce   :  { %103 = vadd.xlane.f32.xlu1 %v102_v40 }
 0x25b   :  { %v104_v42 = vpop.xlane.xlu1 %103 }
 0x25c   :  { %455 = vrcp.f32 %v104_v42 }
 0x266   :  { %v456_v43 = vpop.eup %455 }
 0x267   :  { %v110_v44 = vrot.slane %v456_v43, %v70_v24  ;;  %v114_v46 = vrot.slane %v456_v43, %v74_v25 }
 0x269   :  { %v117_v45 = vmul.f32 %v452_v33, %v110_v44  ;;  %v118_v47 = vmul.f32 %v454_v34, %v114_v46 }
 0x26b   :  { %121 = vperm.xlu0 %446, %v117_v45  }
 0x26f   :  { %202 = vperm.xlu0 %446, %v118_v47  }
 0x2ea   :  { %v122_v48 = vpop.permute.xlu0 %121 }
 0x2eb   :  { %v126_v49 = vrot.slane %v122_v48, %v54_v15 }
 0x2ed   :  { %416 = vmatmul.mubr.msk.f32.vlgmr.msra.gmra.mrb[0].mxu1 %vm127_vm4, %v126_v49 }
 0x2ee   :  { %419 = vmatpush3.msra.mxu1 %v403_v2  ;;  %v203_v50 = vpop.permute.xlu0 %202  ;;  %420 = vmatprep.mubr.msk.f32.mxu1 %vm487_vm3, %v486_v41 }
 0x2ef   :  { %v207_v51 = vrot.slane %v203_v50, %v54_v15 }
 0x2f1   :  { %421 = vmatmul.mubr.msk.f32.vlgmr.msra.gmra.mrb[2].mxu1 %vm127_vm4, %v207_v51 }
 0x3c0   :  { %v196_v59 = vpop.f32.mrb[0].mxu1 }
 0x3c1   :  { %v417_v60 = vpop.f32.mrb[1].mxu1 }
 0x3c4   :  { %v276_v61 = vpop.f32.mrb[2].mxu1 }
 0x3c5   :  { %v293_v62 = vrot.slane %v276_v61, 7  ;;  %v422_v63 = vpop.f32.mrb[3].mxu1 }
 0x3c7   :  { %v294_v0 = vsel %vm60_vm1, %v293_v62, %v196_v59 }
 0x3c8   :  { %432 = vmatmul.mubr.msk.f32.vlgmr.msra.gmra.mrb[0].mxu0 %vm37_vm0, %v294_v0 }
 0x49b   :  { %v363_v2 = vpop.f32.mrb[0].mxu0 }
 0x49c   :  { %v364_v3 = vadd.f32 %v398_v1, %v363_v2  ;;  %v433_v4 = vpop.f32.mrb[1].mxu0 }
 0x49e   :  { %v368_v5 = vsel %vm367_vm5, %v364_v3, -inf }
 0x49f   :  { %369 = vmax.xlane.f32.xlu1 %v368_v5 }
 0x52c   :  { %v370_v6 = vpop.xlane.xlu1 %369 }
 0x52d   :  { %v371_v7 = vsub.f32 %v364_v3, %v370_v6 }
 0x52f   :  { %v372_v8 = vmul.f32 1.442695, %v371_v7 }
 0x531   :  { %457 = vpow2.f32 %v372_v8 }
 0x53b   :  { %v458_v9 = vpop.eup %457 }
 0x53c   :  { %v374_v10 = vsel %vm367_vm5, %v458_v9, 0.0 }
 0x53d   :  { %375 = vadd.xlane.f32.xlu0 %v374_v10 }
 0x5ca   :  { %v376_v11 = vpop.xlane.xlu0 %375 }
 0x5cb   :  { %459 = vlog2.f32 %v376_v11 }
 0x5d5   :  { %v460_v12 = vpop.eup %459 }
 0x5d6   :  { %v378_v13 = vmul.f32 0.6931472, %v460_v12 }
 0x5d8   :  { %v379_v14 = vsub.f32 %v371_v7, %v378_v13 }
 0x5da   :  { %380 = vst.msk [vmem:[#allocation3] sm:$0x3] %vm367_vm5, %v379_v14 }
 0x5db   :  { %472 = shalt.err (!%p469_p4)
}
 0x5dc   :  { %s473_s9 = scalar_lea.hbm %s580_s5, 32 }
 0x5dd   :  { %p474_p5 = scmp.ne.s32.totalorder %s580_s5, %s473_s9  ;;  %p477_p6 = scmp.lt.u32.totalorder %s473_s9, %s580_s5 }
 0x5df   :  { %p479_p7 = pnand %p477_p6, %p474_p5 }
 0x5e1   :  { %482 = shalt.err (!%p479_p7)
}
 0x5e2   :  { %390 = dma.vmem_to_hbm [thread:$0]  %s388_s4, 32, %s580_s5, [#allocation4]  }
 0x5e3   :  { %483 = dma.done.wait [#allocation4], 32  }
 0x5e4   :  { %484 = vsyncadd [#allocation4], 4294967264 }
 0x5e5   :  { %394 = vsyncpa [#allocation4], 1 }

</bundles_post_ra>
